<compile_context>
chip_gen: v7x
topology: tpu7x:2x2x1
jax: 0.10.0
libtpu: 0.0.40
codegen_flags: <defaults>
</compile_context>

<pallas_src>
import jax
import jax.numpy as jnp
from jax.experimental import pallas as pl
from jax.experimental.pallas import tpu as pltpu


def _make_stats_pool_kernel(t_len: int, t_tile: int, floor: float,
                            denom: float, needs_mask: bool):
    inv_t = 1.0 / float(t_len)

    def kernel(x_ref, o_ref, sum_ref, sq_ref):
        k = pl.program_id(1)

        # Zero the accumulators at the start of each batch tile's reduction.
        @pl.when(k == 0)
        def _():
            sum_ref[...] = jnp.zeros_like(sum_ref)
            sq_ref[...] = jnp.zeros_like(sq_ref)

        x = x_ref[...].astype(jnp.float32)            # (Bt, Tt, D), f32 accumulation
        if needs_mask:
            # Mask padded rows of the last (partial) T tile.
            row = jax.lax.broadcasted_iota(jnp.int32, x.shape, dimension=1)
            valid = (row + k * t_tile) < t_len
            x = jnp.where(valid, x, jnp.float32(0.0))

        sum_ref[...] += jnp.sum(x, axis=1)            # Σx   over this T tile
        sq_ref[...] += jnp.sum(x * x, axis=1)         # Σx²  over this T tile

        # Finalize on the last T tile: mean and std from the running sums.
        @pl.when(k == pl.num_programs(1) - 1)
        def _():
            s = sum_ref[...]
            mean = s * inv_t
            # Σ(x - mean)² == Σx² − (Σx)²/T  (done in f32)
            numer = sq_ref[...] - s * mean
            # NOTE: if bessel=True and T == 1, denom == 0 -> inf std,
            # matching the PyTorch module's behavior.
            std = jnp.sqrt(jnp.maximum(numer, floor) / jnp.float32(denom))
            o_ref[:, 0, :] = mean.astype(o_ref.dtype)
            o_ref[:, 1, :] = std.astype(o_ref.dtype)

    return kernel


def stats_pool(x: jax.Array, floor: float = 1e-10, bessel: bool = False,
               *, t_tile: int | None = None, b_tile: int | None = None,
               vmem_budget_bytes: int = 8 << 20) -> jax.Array:
    """Pallas equivalent of StatsPool.forward. x: (B, T, D) -> (B, 2*D)."""
    b, t, d = x.shape
    itemsize = jnp.dtype(x.dtype).itemsize

    # Batch rows per grid step (sublane-dense grouping).
    bt = b_tile if b_tile is not None else min(b, 8)

    # Sublane-packing multiple for the second-to-last block dim
    # (8 for f32, 16 for bf16, 32 for int8).
    mult = 8 * max(1, 4 // itemsize)

    # Size the T tile from a conservative VMEM budget: 2 (double-buffer)
    # x Bt x Tt x D x itemsize must stay well under the scoped VMEM limit
    # on every generation (v5e's 16 MiB default is the tightest).
    if t_tile is None:
        per_row = 2 * bt * d * itemsize
        tt = max(mult, vmem_budget_bytes // max(per_row, 1))
        tt = min(tt, 1024)
        t_tile = t if tt >= t else (tt // mult) * mult
    tt = min(t_tile, t)
    if tt < t and tt % mult != 0:
        tt = max(mult, (tt // mult) * mult)

    denom = (t - 1) if bessel else t
    needs_mask = (t % tt) != 0
    kernel = _make_stats_pool_kernel(t, tt, float(floor), float(denom), needs_mask)

    grid = (pl.cdiv(b, bt), pl.cdiv(t, tt))  # T (reduction) axis last
    # TODO(synk): for v7x with tiny B (1-2), add a second parallel grid axis
    # over D (128-lane multiples) so both TensorCores get work.

    out = pl.pallas_call(
        kernel,
        out_shape=jax.ShapeDtypeStruct((b, 2, d), x.dtype),
        grid_spec=pltpu.PrefetchScalarGridSpec(
            num_scalar_prefetch=0,
            grid=grid,
            in_specs=[pl.BlockSpec((bt, tt, d), lambda bi, ki: (bi, ki, 0))],
            out_specs=pl.BlockSpec((bt, 2, d), lambda bi, ki: (bi, 0, 0)),
            scratch_shapes=[
                pltpu.VMEM((bt, d), jnp.float32),   # Σx   accumulator
                pltpu.VMEM((bt, d), jnp.float32),   # Σx²  accumulator
            ],
        ),
        compiler_params=pltpu.CompilerParams(
            dimension_semantics=("parallel", "arbitrary"),
        ),
    )(x)
    # (B, 2, D) -> (B, 2*D): [mean | std] concatenated along the feature axis.
    return out.reshape(b, 2 * d)


def _reference_stats_pool(x, floor=1e-10, bessel=False):
    means = jnp.mean(x, axis=1)
    t = x.shape[1]
    if bessel:
        t = t - 1
    residuals = x - means[:, None, :]
    numerator = jnp.sum(residuals ** 2, axis=1)
    stds = jnp.sqrt(jnp.maximum(numerator, floor) / t)
    return jnp.concatenate([means, stds], axis=1)


if __name__ == "__main__":
    key = jax.random.PRNGKey(0)
    k1, k2 = jax.random.split(key)

    # Case 1: tiny shapes, single T tile.
    B, T, D = 2, 8, 32
    x = jax.random.normal(k1, (B, T, D), dtype=jnp.float32)
    out = jax.block_until_ready(stats_pool(x))
    ref = _reference_stats_pool(x)
    assert out.shape == (B, 2 * D), out.shape
    assert jnp.allclose(out, ref, atol=1e-5, rtol=1e-5), "mismatch vs reference (case 1)"

    # Case 2: exercise the tiled-T reduction path with a masked remainder tile.
    B2, T2, D2 = 2, 40, 32
    x2 = jax.random.normal(k2, (B2, T2, D2), dtype=jnp.float32)
    out2 = jax.block_until_ready(stats_pool(x2, t_tile=16))
    ref2 = _reference_stats_pool(x2)
    assert out2.shape == (B2, 2 * D2), out2.shape
    assert jnp.allclose(out2, ref2, atol=1e-5, rtol=1e-5), "mismatch vs reference (case 2)"

    print("KERNEL_OK")
</pallas_src>

<mosaic_0001>
module attributes {stable_mosaic.version = 11 : i64} {
  func.func @kernel(%arg0: i32, %arg1: i32, %arg2: memref<2x8x32xf32, #tpu.memory_space<vmem>>, %arg3: memref<2x2x32xf32, #tpu.memory_space<vmem>>, %arg4: memref<2x32xf32, #tpu.memory_space<vmem>>, %arg5: memref<2x32xf32, #tpu.memory_space<vmem>>) attributes {dimension_semantics = [#tpu.dimension_semantics<parallel>, #tpu.dimension_semantics<arbitrary>], iteration_bounds = array<i64: 1, 1>, scalar_prefetch = 0 : i64, scratch_operands = 2 : i64, tpu.core_type = #tpu.core_type<tc>, window_params = [{transform_indices = @transform_0, window_bounds = array<i64: 2, 8, 32>}, {transform_indices = @transform_1, window_bounds = array<i64: 2, 2, 32>}]} {
    %c0_i32 = arith.constant 0 : i32
    %0 = arith.cmpi eq, %arg1, %c0_i32 : i32
    %1 = arith.extui %0 : i1 to i32
    %c0_i32_0 = arith.constant 0 : i32
    %2 = arith.cmpi ne, %1, %c0_i32_0 : i32
    scf.if %2 {
      %cst_14 = arith.constant 0.000000e+00 : f32
      %16 = vector.broadcast %cst_14 : f32 to vector<2x32xf32>
      %c0_15 = arith.constant 0 : index
      %c0_16 = arith.constant 0 : index
      %17 = vector.load %arg4[%c0_15, %c0_16] : memref<2x32xf32, #tpu.memory_space<vmem>>, vector<2x32xf32>
      tpu.vector_store %arg4[%c0_15, %c0_16], %16 {strides = array<i32>} : memref<2x32xf32, #tpu.memory_space<vmem>>, vector<2x32xf32>,
      %cst_17 = arith.constant 0.000000e+00 : f32
      %18 = vector.broadcast %cst_17 : f32 to vector<2x32xf32>
      %c0_18 = arith.constant 0 : index
      %c0_19 = arith.constant 0 : index
      %19 = vector.load %arg5[%c0_18, %c0_19] : memref<2x32xf32, #tpu.memory_space<vmem>>, vector<2x32xf32>
      tpu.vector_store %arg5[%c0_18, %c0_19], %18 {strides = array<i32>} : memref<2x32xf32, #tpu.memory_space<vmem>>, vector<2x32xf32>,
    } else {
    }
    %c0 = arith.constant 0 : index
    %c0_1 = arith.constant 0 : index
    %c0_2 = arith.constant 0 : index
    %3 = vector.load %arg2[%c0, %c0_1, %c0_2] : memref<2x8x32xf32, #tpu.memory_space<vmem>>, vector<2x8x32xf32>
    %c0_3 = arith.constant 0 : index
    %c0_4 = arith.constant 0 : index
    %4 = vector.load %arg4[%c0_3, %c0_4] : memref<2x32xf32, #tpu.memory_space<vmem>>, vector<2x32xf32>
    %cst = arith.constant dense<0.000000e+00> : vector<2x32xf32>
    %5 = vector.multi_reduction <add>, %3, %cst [1] : vector<2x8x32xf32> to vector<2x32xf32>
    %6 = arith.addf %4, %5 : vector<2x32xf32>
    %c0_5 = arith.constant 0 : index
    %c0_6 = arith.constant 0 : index
    %7 = vector.load %arg4[%c0_5, %c0_6] : memref<2x32xf32, #tpu.memory_space<vmem>>, vector<2x32xf32>
    tpu.vector_store %arg4[%c0_5, %c0_6], %6 {strides = array<i32>} : memref<2x32xf32, #tpu.memory_space<vmem>>, vector<2x32xf32>,
    %c0_7 = arith.constant 0 : index
    %c0_8 = arith.constant 0 : index
    %8 = vector.load %arg5[%c0_7, %c0_8] : memref<2x32xf32, #tpu.memory_space<vmem>>, vector<2x32xf32>
    %9 = arith.mulf %3, %3 : vector<2x8x32xf32>
    %cst_9 = arith.constant dense<0.000000e+00> : vector<2x32xf32>
    %10 = vector.multi_reduction <add>, %9, %cst_9 [1] : vector<2x8x32xf32> to vector<2x32xf32>
    %11 = arith.addf %8, %10 : vector<2x32xf32>
    %c0_10 = arith.constant 0 : index
    %c0_11 = arith.constant 0 : index
    %12 = vector.load %arg5[%c0_10, %c0_11] : memref<2x32xf32, #tpu.memory_space<vmem>>, vector<2x32xf32>
    tpu.vector_store %arg5[%c0_10, %c0_11], %11 {strides = array<i32>} : memref<2x32xf32, #tpu.memory_space<vmem>>, vector<2x32xf32>,
    %c0_i32_12 = arith.constant 0 : i32
    %13 = arith.cmpi eq, %arg1, %c0_i32_12 : i32
    %14 = arith.extui %13 : i1 to i32
    %c0_i32_13 = arith.constant 0 : i32
    %15 = arith.cmpi ne, %14, %c0_i32_13 : i32
    scf.if %15 {
      %c0_14 = arith.constant 0 : index
      %c0_15 = arith.constant 0 : index
      %16 = vector.load %arg4[%c0_14, %c0_15] : memref<2x32xf32, #tpu.memory_space<vmem>>, vector<2x32xf32>
      %cst_16 = arith.constant 1.250000e-01 : f32
      %17 = vector.broadcast %cst_16 : f32 to vector<2x32xf32>
      %18 = arith.mulf %16, %17 : vector<2x32xf32>
      %c0_17 = arith.constant 0 : index
      %c0_18 = arith.constant 0 : index
      %19 = vector.load %arg5[%c0_17, %c0_18] : memref<2x32xf32, #tpu.memory_space<vmem>>, vector<2x32xf32>
      %20 = arith.mulf %16, %18 : vector<2x32xf32>
      %21 = arith.subf %19, %20 : vector<2x32xf32>
      %cst_19 = arith.constant 1.000000e-10 : f32
      %22 = vector.broadcast %cst_19 : f32 to vector<2x32xf32>
      %23 = arith.maximumf %21, %22 : vector<2x32xf32>
      %cst_20 = arith.constant 8.000000e+00 : f32
      %24 = vector.broadcast %cst_20 : f32 to vector<2x32xf32>
      %25 = arith.divf %23, %24 : vector<2x32xf32>
      %26 = math.sqrt %25 : vector<2x32xf32>
      %c0_21 = arith.constant 0 : index
      %c0_22 = arith.constant 0 : index
      %c0_23 = arith.constant 0 : index
      %27 = vector.load %arg3[%c0_21, %c0_22, %c0_23] : memref<2x2x32xf32, #tpu.memory_space<vmem>>, vector<2x1x32xf32>
      %28 = vector.shape_cast %27 : vector<2x1x32xf32> to vector<2x32xf32>
      %29 = vector.shape_cast %18 : vector<2x32xf32> to vector<2x1x32xf32>
      tpu.vector_store %arg3[%c0_21, %c0_22, %c0_23], %29 {strides = array<i32>} : memref<2x2x32xf32, #tpu.memory_space<vmem>>, vector<2x1x32xf32>,
      %c0_24 = arith.constant 0 : index
      %c1 = arith.constant 1 : index
      %c0_25 = arith.constant 0 : index
      %30 = vector.load %arg3[%c0_24, %c1, %c0_25] : memref<2x2x32xf32, #tpu.memory_space<vmem>>, vector<2x1x32xf32>
      %31 = vector.shape_cast %30 : vector<2x1x32xf32> to vector<2x32xf32>
      %32 = vector.shape_cast %26 : vector<2x32xf32> to vector<2x1x32xf32>
      tpu.vector_store %arg3[%c0_24, %c1, %c0_25], %32 {strides = array<i32>} : memref<2x2x32xf32, #tpu.memory_space<vmem>>, vector<2x1x32xf32>,
    } else {
    }
    return
  }
  func.func @transform_0(%arg0: i32, %arg1: i32) -> (i32, i32, i32) {
    %c0_i32 = arith.constant 0 : i32
    %c0_i32_0 = arith.constant 0 : i32
    return %arg0, %arg1, %c0_i32 : i32, i32, i32
  }
  func.func @transform_1(%arg0: i32, %arg1: i32) -> (i32, i32, i32) {
    %c0_i32 = arith.constant 0 : i32
    %c0_i32_0 = arith.constant 0 : i32
    %c0_i32_1 = arith.constant 0 : i32
    return %arg0, %c0_i32, %c0_i32_0 : i32, i32, i32
  }
}

</mosaic_0001>

<bundles_post_ra>
// kernel: tpu_custom_call.1
= control target key start
LH: loop header
LB: loop body
LE: loop exit
PB: predicated region body
PF: predicated region fallthrough
CT: control target
= control target key end

     0   :  { %6 = vsyncpa [#allocation5], 0  ;;  %s277_s0 = inlined_call_operand.hbm [shape: f32[2,8,32], index: 0, kind: input, shape index: {}]   ;;  %s278_s1 = inlined_call_operand.hbm [shape: f32[2,2,32], index: 1, kind: output, shape index: {}]  }
   0x1   :  { %7 = vsyncpa [#allocation6], 0  ;;  %s227_s6 = smov [#allocation4]   ;;  %s179_s10 = scalar_lea.hbm %s277_s0, 256 }
   0x2   :  { %s13_s7 = sshll.u32 %s227_s6, 4  ;;  %p180_p0 = scmp.ne.s32.totalorder %s277_s0, %s179_s10  ;;  %s14_s7 = int_to_ptr.vmem [resolvable:$true] %s13_s7 }
   0x3   :  { %p183_p1 = scmp.lt.u32.totalorder %s179_s10, %s277_s0 }
   0x5   :  { %p185_p2 = pnand %p183_p1, %p180_p0 }
   0x7   :  { %188 = shalt.err (!%p185_p2)
}
   0x8   :  { %s189_s15 = scalar_lea.vmem %s14_s7, 256  ;;  %p194_p4 = scmp.lt.s32.totalorder %s14_s7, %s14_s7 }
   0x9   :  { %p190_p3 = scmp.ne.s32.totalorder %s14_s7, %s189_s15  ;;  %p195_p5 = scmp.lt.s32.totalorder %s189_s15, %s189_s15 }
   0xb   :  { %p196_p6 = por %p195_p5, %p194_p4 }
   0xd   :  { %p197_p7 = pnand %p196_p6, %p190_p3 }
   0xf   :  { %200 = shalt.err (!%p197_p7)
}
  0x10   :  { %s228_s16 = smov 128   ;;  %s229_s17 = smov 8  }
  0x11   :  { %19 = dma.hbm_to_vmem [thread:$0]  %s277_s0, 256, %s14_s7, [#allocation5], %s228_s16, %s228_s16, %s229_s17  }
  0x12   :  { %223 = dma.done.wait [#allocation5], 256  }
  0x13   :  { %224 = vsyncadd [#allocation5], 4294967040  ;;  %vm27_vm0 = vcmask 254976   ;;  %v230_v0 = vmov 0.0   ;;  %vm33_vm1 = vcmask 261120   ;;  %v30_v1 = vld [vmem:[#allocation4] sm:$0xff]  ;;  %v101_v39 = vlaneseq }
  0x14   :  { %28 = vst.msk [vmem:[#allocation2] sm:$0x3] %vm27_vm0, %v230_v0  ;;  %29 = vst.msk [vmem:[#allocation3] sm:$0x3] %vm27_vm0, %v230_v0  ;;  %v31_v2 = vld [vmem:[#allocation4 + $0x8] sm:$0xff]  ;;  %v34_v3 = vsel %vm33_vm1, %v30_v1, 0.0  ;;  %v57_v5 = vmul.f32 %v30_v1, %v30_v1 }
  0x15   :  { %v41_v4 = vsel %vm33_vm1, %v31_v2, 0.0  ;;  %v58_v6 = vmul.f32 %v31_v2, %v31_v2  ;;  %v35_v7 = vrot.slane %v34_v3, 4  ;;  %vm50_vm2 = vcmask 1041409   ;;  %s232_s0 = smov [#allocation7]  }
  0x16   :  { %v42_v8 = vrot.slane %v41_v4, 4  ;;  %v59_v9 = vsel %vm33_vm1, %v57_v5, 0.0  ;;  %v231_v37 = vmov 1966171168   ;;  %v102_v43 = vshrl.u32 %v101_v39, 7  ;;  %s157_s20 = sshll.u32 %s232_s0, 4  ;;  %s158_s20 = int_to_ptr.vmem [resolvable:$true] %s157_s20 }
  0x17   :  { %v66_v10 = vsel %vm33_vm1, %v58_v6, 0.0  ;;  %v36_v11 = vadd.f32 %v35_v7, %v34_v3  ;;  %v60_v13 = vrot.slane %v59_v9, 4  ;;  %v99_v38 = vunpack.c.l.s4 %v231_v37  ;;  %s201_s21 = scalar_lea.vmem %s158_s20, 64  ;;  %p206_p9 = scmp.lt.s32.totalorder %s158_s20, %s158_s20 }
  0x18   :  { %v43_v12 = vadd.f32 %v42_v8, %v41_v4  ;;  %v67_v14 = vrot.slane %v66_v10, 4  ;;  %vm122_vm3 = vcmask 253952   ;;  %p202_p8 = scmp.ne.s32.totalorder %s158_s20, %s201_s21  ;;  %p207_p10 = scmp.lt.s32.totalorder %s201_s21, %s201_s21 }
  0x19   :  { %v37_v15 = vrot.slane %v36_v11, 2  ;;  %v61_v17 = vadd.f32 %v60_v13, %v59_v9  ;;  %v100_v42 = vunpack.c.0.s8 %v99_v38 }
  0x1a   :  { %v44_v16 = vrot.slane %v43_v12, 2  ;;  %v68_v18 = vadd.f32 %v67_v14, %v66_v10  ;;  %p208_p11 = por %p207_p10, %p206_p9 }
  0x1b   :  { %v38_v19 = vadd.f32 %v37_v15, %v36_v11  ;;  %v62_v21 = vrot.slane %v61_v17, 2  ;;  %v32_v27 = vld [vmem:[#allocation2] sm:$0x3]  ;;  %v56_v33 = vld [vmem:[#allocation3] sm:$0x3]  ;;  %v103_v44 = vsub.s32 %v100_v42, %v102_v43 }
  0x1c   :  { %v45_v20 = vadd.f32 %v44_v16, %v43_v12  ;;  %v69_v22 = vrot.slane %v68_v18, 2  ;;  %p209_p12 = pnand %p208_p11, %p202_p8 }
  0x1d   :  { %v39_v23 = vrot.slane %v38_v19, 1  ;;  %v63_v25 = vadd.f32 %v62_v21, %v61_v17 }
  0x1e   :  { %v46_v24 = vrot.slane %v45_v20, 1  ;;  %v70_v26 = vadd.f32 %v69_v22, %v68_v18 }
  0x1f   :  { %v40_v28 = vadd.f32 %v39_v23, %v38_v19  ;;  %v64_v30 = vrot.slane %v63_v25, 1 }
  0x20   :  { %v47_v29 = vadd.f32 %v46_v24, %v45_v20  ;;  %v71_v31 = vrot.slane %v70_v26, 1 }
  0x21   :  { %v65_v34 = vadd.f32 %v64_v30, %v63_v25 }
  0x22   :  { %v51_v32 = vsel %vm50_vm2, %v47_v29, %v40_v28  ;;  %v72_v35 = vadd.f32 %v71_v31, %v70_v26 }
  0x23   :  { %v53_v36 = vadd.f32 %v51_v32, %v32_v27 }
  0x24   :  { %v75_v40 = vsel %vm50_vm2, %v72_v35, %v65_v34 }
  0x25   :  { %55 = vst.msk [vmem:[#allocation2] sm:$0x3] %vm27_vm0, %v53_v36  ;;  %v77_v41 = vadd.f32 %v75_v40, %v56_v33 }
  0x27   :  { %78 = vst.msk [vmem:[#allocation3] sm:$0x3] %vm27_vm0, %v77_v41 }
  0x2c   :  { %v82_v45 = vld [vmem:[#allocation2] sm:$0x3] }
  0x2d   :  { %v83_v46 = vmul.f32 0.125, %v82_v45 }
  0x2e   :  { %v84_v47 = vld [vmem:[#allocation3] sm:$0x3] }
  0x2f   :  { %v85_v48 = vmul.f32 %v83_v46, %v82_v45  ;;  %v104_v49 = vrot.slane %v83_v46, %v103_v44 }
  0x31   :  { %v86_v50 = vsub.f32 %v84_v47, %v85_v48  ;;  %v112_v51 = vrot.slane %v104_v49, %v103_v44  ;;  %v105_v52 = vcombine.high %v104_v49, %v104_v49 }
  0x33   :  { %v87_v53 = vmax.f32 %v86_v50, 1e-10  ;;  %123 = vst.msk [vmem:[#allocation7] sm:$0x1] %vm122_vm3, %v112_v51  ;;  %v119_v54 = vrot.slane %v105_v52, %v103_v44 }
  0x35   :  { %v89_v55 = vmul.f32 0.125, %v87_v53  ;;  %124 = vst.msk [vmem:[#allocation7 + $0x2] sm:$0x1] %vm122_vm3, %v119_v54 }
  0x37   :  { %177 = vrsqrt.f32 %v89_v55  ;;  %vm92_vm4 = vcmp.eq.f32.partialorder %v89_v55, inf  ;;  %v95_v58 = vand.u32 2147483648, %v89_v55  ;;  %vm94_vm5 = vcmp.eq.f32.partialorder %v89_v55, 0.0 }
  0x41   :  { %v178_v56 = vpop.eup %177 }
  0x42   :  { %v91_v57 = vmul.f32 %v178_v56, %v89_v55 }
  0x44   :  { %v93_v59 = vsel %vm92_vm4, %v89_v55, %v91_v57 }
  0x45   :  { %v96_v60 = vsel %vm94_vm5, %v95_v58, %v93_v59 }
  0x46   :  { %v132_v61 = vrot.slane %v96_v60, %v103_v44 }
  0x48   :  { %v140_v62 = vrot.slane %v132_v61, %v103_v44  ;;  %v133_v63 = vcombine.high %v132_v61, %v132_v61 }
  0x4a   :  { %150 = vst.msk [vmem:[#allocation7 + $0x1] sm:$0x1] %vm122_vm3, %v140_v62  ;;  %v147_v0 = vrot.slane %v133_v63, %v103_v44 }
  0x4c   :  { %151 = vst.msk [vmem:[#allocation7 + $0x3] sm:$0x1] %vm122_vm3, %v147_v0 }
  0x4d   :  { %212 = shalt.err (!%p209_p12)
}
  0x4e   :  { %s213_s24 = scalar_lea.hbm %s278_s1, 64 }
  0x4f   :  { %p214_p13 = scmp.ne.s32.totalorder %s278_s1, %s213_s24  ;;  %p217_p0 = scmp.lt.u32.totalorder %s213_s24, %s278_s1 }
  0x51   :  { %p219_p1 = pnand %p217_p0, %p214_p13 }
  0x53   :  { %222 = shalt.err (!%p219_p1)
}
  0x54   :  { %s233_s29 = smov 32   ;;  %s234_s30 = smov 2  }
  0x55   :  { %163 = dma.vmem_to_hbm [thread:$0]  %s158_s20, 64, %s278_s1, [#allocation6], %s233_s29, %s233_s29, %s234_s30  }
  0x56   :  { %225 = dma.done.wait [#allocation6], 64  }
  0x57   :  { %226 = vsyncadd [#allocation6], 4294967232 }
  0x58   :  { %167 = vsyncpa [#allocation5], 1 }
  0x59   :  { %168 = vsyncpa [#allocation6], 1 }

</bundles_post_ra>
